<compile_context>
chip_gen: v7x
topology: tpu7x:2x2x1
jax: 0.10.0
libtpu: 0.0.40
codegen_flags: <defaults>
</compile_context>

<pallas_src>
import functools

import jax
import jax.numpy as jnp
from jax import lax
from jax.experimental import pallas as pl
from jax.experimental.pallas import tpu as pltpu


def _embed_tile(ids_ref, table_ref, *, vocab):
    """Gather tb embedding rows via a one-hot (tb, V) @ (V, D) MXU matmul."""
    ids = ids_ref[...]                                             # (tb, 1) int32, one vld
    cols = lax.broadcasted_iota(jnp.int32, (ids.shape[0], vocab), 1)
    onehot = (cols == ids).astype(table_ref.dtype)                 # (tb, V), pure VPU
    return jnp.dot(onehot, table_ref[...], preferred_element_type=jnp.float32)


def _wordrep_kernel(ids_ref, table_ref, out_ref, *, vocab):
    """Eval mode: embedding lookup only."""
    out_ref[...] = _embed_tile(ids_ref, table_ref, vocab=vocab).astype(out_ref.dtype)


def _wordrep_dropout_kernel(ids_ref, table_ref, u_ref, out_ref, *, vocab, dropout_p):
    """Training mode: embedding lookup + inverted dropout.

    u_ref holds precomputed uniform [0,1) randoms for this tile; keep-test is a
    single compare, scale folded into one select."""
    emb = _embed_tile(ids_ref, table_ref, vocab=vocab)
    keep = u_ref[...] >= jnp.float32(dropout_p)
    scale = jnp.float32(1.0 / (1.0 - dropout_p))
    out_ref[...] = jnp.where(keep, emb * scale, 0.0).astype(out_ref.dtype)


def wordrep_forward(word_input, embedding_table, *, dropout_p=0.0, rng_key=None, tb=128):
    """Pallas implementation of WordRep.forward.

    word_input:       (B, S) int token ids
    embedding_table:  (V, D) float32 (pretrain_word_embedding)
    dropout_p:        training-mode dropout probability (0.0 == eval mode)
    rng_key:          jax PRNG key used for the dropout mask when dropout_p > 0
    tb:               token tile (MXU-edge aligned; 128 for v5e, 256 for v6e/v7x)
    returns:          (B, S, D) float32
    """
    B, S = word_input.shape
    V, D = embedding_table.shape
    T = B * S
    Tpad = ((T + tb - 1) // tb) * tb

    # One-hot MXU gather keeps the whole table resident in VMEM; only valid for
    # tables that comfortably fit (v7x has 64 MiB physical VMEM).
    table_bytes = V * D * jnp.dtype(embedding_table.dtype).itemsize
    if table_bytes > 8 * 1024 * 1024:
        # TODO(synk): large-vocab path — replace the one-hot MXU gather with a
        # scalar-prefetch-driven DMA row gather from an HBM-resident table.
        raise NotImplementedError("embedding table too large for VMEM-resident one-hot gather")

    ids = word_input.reshape(T).astype(jnp.int32)
    if Tpad != T:
        ids = jnp.concatenate([ids, jnp.zeros((Tpad - T,), jnp.int32)])
    ids2d = ids.reshape(Tpad, 1)

    ids_spec = pl.BlockSpec((tb, 1), lambda i: (i, 0))
    table_spec = pl.BlockSpec((V, D), lambda i: (0, 0))     # constant block -> resident
    tile_spec = pl.BlockSpec((tb, D), lambda i: (i, 0))

    bytes_accessed = table_bytes + Tpad * 4 + Tpad * D * 4
    if dropout_p > 0.0:
        if rng_key is None:
            rng_key = jax.random.PRNGKey(0)
        u = jax.random.uniform(rng_key, (Tpad, D), dtype=jnp.float32)
        kernel = functools.partial(
            _wordrep_dropout_kernel, vocab=V, dropout_p=float(dropout_p))
        in_specs = [ids_spec, table_spec, tile_spec]
        args = (ids2d, embedding_table, u)
        bytes_accessed += Tpad * D * 4
    else:
        kernel = functools.partial(_wordrep_kernel, vocab=V)
        in_specs = [ids_spec, table_spec]
        args = (ids2d, embedding_table)

    out = pl.pallas_call(
        kernel,
        out_shape=jax.ShapeDtypeStruct((Tpad, D), jnp.float32),
        grid=(Tpad // tb,),
        in_specs=in_specs,
        out_specs=tile_spec,
        compiler_params=pltpu.CompilerParams(
            dimension_semantics=("parallel",),   # no cross-step state -> megacore OK
        ),
        cost_estimate=pl.CostEstimate(
            flops=2 * Tpad * V * D,
            transcendentals=0,
            bytes_accessed=bytes_accessed,
        ),
    )(*args)

    return out[:T].reshape(B, S, D)


if __name__ == "__main__":
    # Small deterministic configuration (args.use_pre=True, args.freeze=True,
    # args.word_emb_dim=256, args.dropout=0.1, vocab=64, batch=2, seq=8).
    # The `use_char` branch of the reference module is a no-op.
    key = jax.random.PRNGKey(0)
    k_emb, k_ids, k_drop = jax.random.split(key, 3)

    VOCAB, EMB_DIM = 64, 256
    BATCH, SEQ = 2, 8
    DROPOUT = 0.1

    pretrain_word_embedding = jax.random.normal(
        k_emb, (VOCAB, EMB_DIM), dtype=jnp.float32)
    word_input = jax.random.randint(k_ids, (BATCH, SEQ), 0, VOCAB, dtype=jnp.int32)

    # Eval-mode: pure embedding lookup, compare against jnp.take reference.
    out_eval = jax.block_until_ready(
        wordrep_forward(word_input, pretrain_word_embedding, dropout_p=0.0))
    ref = jnp.take(pretrain_word_embedding, word_input, axis=0)
    assert out_eval.shape == (BATCH, SEQ, EMB_DIM)
    assert jnp.allclose(out_eval, ref, atol=1e-5, rtol=1e-5)

    # Training-mode: inverted dropout — every element must be either 0 or
    # ref / (1 - p).
    out_train = jax.block_until_ready(
        wordrep_forward(word_input, pretrain_word_embedding,
                        dropout_p=DROPOUT, rng_key=k_drop))
    assert out_train.shape == (BATCH, SEQ, EMB_DIM)
    assert bool(jnp.all(jnp.isfinite(out_train)))
    scaled = ref / (1.0 - DROPOUT)
    is_zero = jnp.isclose(out_train, 0.0, atol=1e-6)
    is_kept = jnp.isclose(out_train, scaled, atol=1e-5, rtol=1e-5)
    assert bool(jnp.all(is_zero | is_kept))

    print("KERNEL_OK")
</pallas_src>

<mosaic_0001>
module attributes {stable_mosaic.version = 11 : i64} {
  func.func @_wordrep_kernel(%arg0: i32, %arg1: memref<128x1xi32, #tpu.memory_space<vmem>>, %arg2: memref<64x256xf32, #tpu.memory_space<vmem>>, %arg3: memref<128x256xf32, #tpu.memory_space<vmem>>) attributes {dimension_semantics = [#tpu.dimension_semantics<parallel>], iteration_bounds = array<i64: 1>, scalar_prefetch = 0 : i64, scratch_operands = 0 : i64, tpu.core_type = #tpu.core_type<tc>, window_params = [{transform_indices = @transform_0, window_bounds = array<i64: 128, 1>}, {pipeline_mode = #tpu.pipeline_mode<synchronous>, transform_indices = @transform_1, window_bounds = array<i64: 64, 256>}, {transform_indices = @transform_2, window_bounds = array<i64: 128, 256>}]} {
    %c0 = arith.constant 0 : index
    %c0_0 = arith.constant 0 : index
    %0 = vector.load %arg1[%c0, %c0_0] : memref<128x1xi32, #tpu.memory_space<vmem>>, vector<128x1xi32>
    %1 = tpu.iota {dimensions = array<i32: 1>} : vector<128x64xi32>
    %2 = vector.broadcast %0 : vector<128x1xi32> to vector<128x64xi32>
    %3 = arith.cmpi eq, %1, %2 : vector<128x64xi32>
    %4 = arith.extui %3 : vector<128x64xi1> to vector<128x64xi32>
    %5 = arith.sitofp %4 : vector<128x64xi32> to vector<128x64xf32>
    %c0_1 = arith.constant 0 : index
    %c0_2 = arith.constant 0 : index
    %6 = vector.load %arg2[%c0_1, %c0_2] : memref<64x256xf32, #tpu.memory_space<vmem>>, vector<64x256xf32>
    %cst = arith.constant dense<0.000000e+00> : vector<128x256xf32>
    %7 = tpu.matmul %5, %6, %cst {dimension_numbers = #tpu.dot_dimension_numbers<[1], [0], [0], [1], [0, 0, 1, 1], [], []>} : vector<128x64xf32>, vector<64x256xf32>, vector<128x256xf32> -> vector<128x256xf32>
    %c0_3 = arith.constant 0 : index
    %c0_4 = arith.constant 0 : index
    %8 = vector.load %arg3[%c0_3, %c0_4] : memref<128x256xf32, #tpu.memory_space<vmem>>, vector<128x256xf32>
    tpu.vector_store %arg3[%c0_3, %c0_4], %7 {strides = array<i32>} : memref<128x256xf32, #tpu.memory_space<vmem>>, vector<128x256xf32>,
    return
  }
  func.func @transform_0(%arg0: i32) -> (i32, i32) {
    %c0_i32 = arith.constant 0 : i32
    %c0_i32_0 = arith.constant 0 : i32
    return %arg0, %c0_i32 : i32, i32
  }
  func.func @transform_1(%arg0: i32) -> (i32, i32) {
    %c0_i32 = arith.constant 0 : i32
    %c0_i32_0 = arith.constant 0 : i32
    %c0_i32_1 = arith.constant 0 : i32
    return %c0_i32, %c0_i32_0 : i32, i32
  }
  func.func @transform_2(%arg0: i32) -> (i32, i32) {
    %c0_i32 = arith.constant 0 : i32
    %c0_i32_0 = arith.constant 0 : i32
    return %arg0, %c0_i32 : i32, i32
  }
}

</mosaic_0001>

<bundles_post_ra>
// kernel: tpu_custom_call.1
= control target key start
LH: loop header
LB: loop body
LE: loop exit
PB: predicated region body
PF: predicated region fallthrough
CT: control target
= control target key end

     0   :  { %v487_v2 = vmov 0   ;;  %v488_v5 = vmov 0.0   ;;  %s681_s0 = inlined_call_operand.vmem [shape: s32[128,1], index: 0, kind: input, shape index: {}]   ;;  %s682_s1 = inlined_call_operand.vmem [shape: f32[64,256], index: 1, kind: input, shape index: {}]   ;;  %s683_s2 = inlined_call_operand.hbm [shape: f32[128,256], index: 2, kind: output, shape index: {}]  }
   0x1   :  { %v13_v0 = vld [vmem:[%s681_s0 + $0x8] sm:$0xff]  ;;  %v12_v1 = vld [vmem:[%s681_s0] sm:$0xff]  ;;  %462 = vset.pattern.permute.xlu1 %v487_v2  ;;  %461 = vset.pattern.permute.xlu0 %v487_v2  ;;  %v22_v6 = vld [vmem:[%s681_s0 + $0x50] sm:$0xff] }
   0x2   :  { %34 = vperm.xlu1 %462, %v13_v0   ;;  %31 = vperm.xlu0 %461, %v12_v1   ;;  %v21_v3 = vld [vmem:[%s681_s0 + $0x48] sm:$0xff]  ;;  %v20_v4 = vld [vmem:[%s681_s0 + $0x40] sm:$0xff]  ;;  %v14_v7 = vld [vmem:[%s681_s0 + $0x10] sm:$0xff] }
   0x3   :  { %255 = vmatprep.mubr.f32.mxu0 %v488_v5  ;;  %303 = vmatprep.mubr.f32.mxu1 %v488_v5  ;;  %v127_v8 = vld [vmem:[%s682_s1 + $0x8] sm:$0xff]  ;;  %v129_v9 = vld [vmem:[%s682_s1 + $0x18] sm:$0xff]  ;;  %v126_v11 = vld [vmem:[%s682_s1] sm:$0xff] }
   0x4   :  { %v432_v10 = vpack.c.bf16 %v129_v9, %v127_v8  ;;  %v128_v12 = vld [vmem:[%s682_s1 + $0x10] sm:$0xff]  ;;  %v131_v13 = vld [vmem:[%s682_s1 + $0x28] sm:$0xff]  ;;  %v133_v15 = vld [vmem:[%s682_s1 + $0x38] sm:$0xff] }
   0x5   :  { %v434_v14 = vpack.c.bf16 %v128_v12, %v126_v11  ;;  %v130_v16 = vld [vmem:[%s682_s1 + $0x20] sm:$0xff]  ;;  %v132_v17 = vld [vmem:[%s682_s1 + $0x30] sm:$0xff]  ;;  %v436_v18 = vpack.c.bf16 %v133_v15, %v131_v13  ;;  %v135_v19 = vld [vmem:[%s682_s1 + $0x48] sm:$0xff] }
   0x6   :  { %58 = vperm.xlu1 %462, %v21_v3   ;;  %55 = vperm.xlu0 %461, %v20_v4   ;;  %v137_v20 = vld [vmem:[%s682_s1 + $0x58] sm:$0xff]  ;;  %v438_v21 = vpack.c.bf16 %v132_v17, %v130_v16  ;;  %v134_v22 = vld [vmem:[%s682_s1 + $0x40] sm:$0xff]  ;;  %v136_v23 = vld [vmem:[%s682_s1 + $0x50] sm:$0xff] }
   0x7   :  { %433 = vmatprep.subr.bf16.mxu0 %v432_v10  ;;  %448 = vmatprep.subr.bf16.mxu1 %v432_v10 }
   0x8   :  { %435 = vmatpush1.bf16.msra.mxu0 %v434_v14  ;;  %452 = vmatpush1.bf16.msra.mxu1 %v434_v14 }
   0xa   :  { %61 = vperm.xlu1 %462, %v22_v6   ;;  %37 = vperm.xlu0 %461, %v14_v7  }
   0xb   :  { %7 = vsyncpa [#allocation3], 0  ;;  %v23_v24 = vld [vmem:[%s681_s0 + $0x58] sm:$0xff]  ;;  %437 = vmatprep.subr.bf16.mxu0 %v436_v18  ;;  %449 = vmatprep.subr.bf16.mxu1 %v436_v18  ;;  %v440_v26 = vpack.c.bf16 %v137_v20, %v135_v19  ;;  %v139_v27 = vld [vmem:[%s682_s1 + $0x68] sm:$0xff]  ;;  %v442_v29 = vpack.c.bf16 %v136_v23, %v134_v22  ;;  %v28_v42 = vlaneseq  ;;  %vm142_vm0 = vcmask 523264  }
   0xc   :  { %v15_v25 = vld [vmem:[%s681_s0 + $0x18] sm:$0xff]  ;;  %439 = vmatpush1.bf16.msra.mxu0 %v438_v21  ;;  %453 = vmatpush1.bf16.msra.mxu1 %v438_v21  ;;  %v138_v30 = vld [vmem:[%s682_s1 + $0x60] sm:$0xff]  ;;  %v140_v31 = vld [vmem:[%s682_s1 + $0x70] sm:$0xff] }
   0xd   :  { %v141_v28 = vld [vmem:[%s682_s1 + $0x78] sm:$0xff]  ;;  %v24_v32 = vld [vmem:[%s681_s0 + $0x60] sm:$0xff]  ;;  %441 = vmatprep.subr.bf16.mxu0 %v440_v26  ;;  %450 = vmatprep.subr.bf16.mxu1 %v440_v26  ;;  %v446_v35 = vpack.c.bf16 %v140_v31, %v138_v30  ;;  %v25_v36 = vld [vmem:[%s681_s0 + $0x68] sm:$0xff]  ;;  %v605_v43 = vand.u32 127, %v28_v42 }
   0xe   :  { %64 = vperm.xlu1 %462, %v23_v24   ;;  %40 = vperm.xlu0 %461, %v15_v25   ;;  %v16_v33 = vld [vmem:[%s681_s0 + $0x20] sm:$0xff]  ;;  %v444_v34 = vpack.c.bf16 %v141_v28, %v139_v27  ;;  %v17_v37 = vld [vmem:[%s681_s0 + $0x28] sm:$0xff]  ;;  %v26_v38 = vld [vmem:[%s681_s0 + $0x70] sm:$0xff] }
   0xf   :  { %v18_v39 = vld [vmem:[%s681_s0 + $0x30] sm:$0xff]  ;;  %v27_v40 = vld [vmem:[%s681_s0 + $0x78] sm:$0xff] }
  0x10   :  { %443 = vmatpush1.bf16.msra.mxu0 %v442_v29  ;;  %454 = vmatpush1.bf16.msra.mxu1 %v442_v29  ;;  %v19_v41 = vld [vmem:[%s681_s0 + $0x38] sm:$0xff]  ;;  %s489_s0 = smov [#allocation2]  }
  0x11   :  { %445 = vmatprep.subr.bf16.mxu0 %v444_v34  ;;  %451 = vmatprep.subr.bf16.mxu1 %v444_v34  ;;  %s389_s16 = sshll.u32 %s489_s0, 4  ;;  %s390_s16 = int_to_ptr.vmem [resolvable:$true] %s389_s16 }
  0x12   :  { %67 = vperm.xlu1 %462, %v24_v32   ;;  %43 = vperm.xlu0 %461, %v16_v33   ;;  %s463_s17 = scalar_lea.vmem %s390_s16, 4096  ;;  %p468_p1 = scmp.lt.s32.totalorder %s390_s16, %s390_s16 }
  0x13   :  { %p464_p0 = scmp.ne.s32.totalorder %s390_s16, %s463_s17  ;;  %p469_p2 = scmp.lt.s32.totalorder %s463_s17, %s463_s17 }
  0x14   :  { %447 = vmatpush1.bf16.msra.mxu0 %v446_v35  ;;  %455 = vmatpush1.bf16.msra.mxu1 %v446_v35 }
  0x15   :  { %p470_p3 = por %p469_p2, %p468_p1 }
  0x16   :  { %70 = vperm.xlu1 %462, %v25_v36   ;;  %46 = vperm.xlu0 %461, %v17_v37  }
  0x17   :  { %p471_p4 = pnand %p470_p3, %p464_p0 }
  0x1a   :  { %73 = vperm.xlu1 %462, %v26_v38   ;;  %49 = vperm.xlu0 %461, %v18_v39  }
  0x1e   :  { %76 = vperm.xlu1 %462, %v27_v40   ;;  %52 = vperm.xlu0 %461, %v19_v41  }
  0x81   :  { %v35_v44 = vpop.permute.xlu1 %34  ;;  %v32_v45 = vpop.permute.xlu0 %31 }
  0x82   :  { %vm79_vm1 = vcmp.eq.s32.totalorder %v605_v43, %v35_v44  ;;  %vm78_vm2 = vcmp.eq.s32.totalorder %v605_v43, %v32_v45 }
  0x83   :  { %v400_v46 = vsel %vm78_vm2, 1.0, %v488_v5  ;;  %v401_v47 = vsel %vm79_vm1, 1.0, %v488_v5 }
  0x84   :  { %416 = vmatmul.mubr.msk.f32.vlgmr.msra.gmra.mrb[0].mxu0 %vm142_vm0, %v400_v46 }
  0x85   :  { %v59_v48 = vpop.permute.xlu1 %58  ;;  %v56_v49 = vpop.permute.xlu0 %55  ;;  %261 = vmatprep.mubr.f32.mxu0 %v488_v5 }
  0x86   :  { %vm86_vm3 = vcmp.eq.s32.totalorder %v605_v43, %v56_v49  ;;  %vm87_vm4 = vcmp.eq.s32.totalorder %v605_v43, %v59_v48 }
  0x87   :  { %v408_v50 = vsel %vm86_vm3, 1.0, %v488_v5  ;;  %v409_v53 = vsel %vm87_vm4, 1.0, %v488_v5 }
  0x88   :  { %417 = vmatmul.mubr.msk.f32.gmra.mrb[2].mxu0 %vm142_vm0, %v401_v47  ;;  %424 = vmatmul.mubr.msk.f32.vlgmr.msra.gmra.mrb[0].mxu1 %vm142_vm0, %v408_v50 }
  0x89   :  { %v62_v51 = vpop.permute.xlu1 %61  ;;  %v38_v52 = vpop.permute.xlu0 %37  ;;  %267 = vmatprep.mubr.f32.mxu0 %v488_v5  ;;  %309 = vmatprep.mubr.f32.mxu1 %v488_v5 }
  0x8a   :  { %vm80_vm5 = vcmp.eq.s32.totalorder %v605_v43, %v38_v52  ;;  %vm88_vm6 = vcmp.eq.s32.totalorder %v605_v43, %v62_v51 }
  0x8b   :  { %v402_v54 = vsel %vm80_vm5, 1.0, %v488_v5  ;;  %v410_v57 = vsel %vm88_vm6, 1.0, %v488_v5 }
  0x8c   :  { %418 = vmatmul.mubr.msk.f32.gmra.mrb[4].mxu0 %vm142_vm0, %v402_v54  ;;  %425 = vmatmul.mubr.msk.f32.gmra.mrb[2].mxu1 %vm142_vm0, %v409_v53 }
  0x8d   :  { %v65_v55 = vpop.permute.xlu1 %64  ;;  %v41_v56 = vpop.permute.xlu0 %40  ;;  %273 = vmatprep.mubr.f32.mxu0 %v488_v5  ;;  %315 = vmatprep.mubr.f32.mxu1 %v488_v5 }
  0x8e   :  { %vm81_vm7 = vcmp.eq.s32.totalorder %v605_v43, %v41_v56  ;;  %vm89_vm8 = vcmp.eq.s32.totalorder %v605_v43, %v65_v55 }
  0x8f   :  { %v403_v58 = vsel %vm81_vm7, 1.0, %v488_v5  ;;  %v411_v61 = vsel %vm89_vm8, 1.0, %v488_v5 }
  0x90   :  { %419 = vmatmul.mubr.msk.f32.gmra.mrb[6].mxu0 %vm142_vm0, %v403_v58  ;;  %426 = vmatmul.mubr.msk.f32.gmra.mrb[4].mxu1 %vm142_vm0, %v410_v57 }
  0x91   :  { %v68_v59 = vpop.permute.xlu1 %67  ;;  %v44_v60 = vpop.permute.xlu0 %43  ;;  %279 = vmatprep.mubr.f32.mxu0 %v488_v5  ;;  %321 = vmatprep.mubr.f32.mxu1 %v488_v5 }
  0x92   :  { %vm82_vm9 = vcmp.eq.s32.totalorder %v605_v43, %v44_v60  ;;  %vm90_vm10 = vcmp.eq.s32.totalorder %v605_v43, %v68_v59 }
  0x93   :  { %v404_v62 = vsel %vm82_vm9, 1.0, %v488_v5  ;;  %v412_v1 = vsel %vm90_vm10, 1.0, %v488_v5 }
  0x94   :  { %420 = vmatmul.mubr.msk.f32.gmra.mrb[8].mxu0 %vm142_vm0, %v404_v62  ;;  %427 = vmatmul.mubr.msk.f32.gmra.mrb[6].mxu1 %vm142_vm0, %v411_v61 }
  0x95   :  { %v71_v63 = vpop.permute.xlu1 %70  ;;  %v47_v0 = vpop.permute.xlu0 %46  ;;  %285 = vmatprep.mubr.f32.mxu0 %v488_v5  ;;  %327 = vmatprep.mubr.f32.mxu1 %v488_v5 }
  0x96   :  { %vm83_vm11 = vcmp.eq.s32.totalorder %v605_v43, %v47_v0  ;;  %vm91_vm12 = vcmp.eq.s32.totalorder %v605_v43, %v71_v63 }
  0x97   :  { %v405_v2 = vsel %vm83_vm11, 1.0, %v488_v5  ;;  %v413_v6 = vsel %vm91_vm12, 1.0, %v488_v5 }
  0x98   :  { %421 = vmatmul.mubr.msk.f32.gmra.mrb[10].mxu0 %vm142_vm0, %v405_v2  ;;  %428 = vmatmul.mubr.msk.f32.gmra.mrb[8].mxu1 %vm142_vm0, %v412_v1 }
  0x99   :  { %v74_v3 = vpop.permute.xlu1 %73  ;;  %v50_v4 = vpop.permute.xlu0 %49  ;;  %291 = vmatprep.mubr.f32.mxu0 %v488_v5  ;;  %333 = vmatprep.mubr.f32.mxu1 %v488_v5 }
  0x9a   :  { %vm84_vm13 = vcmp.eq.s32.totalorder %v605_v43, %v50_v4  ;;  %vm92_vm14 = vcmp.eq.s32.totalorder %v605_v43, %v74_v3 }
  0x9b   :  { %v406_v7 = vsel %vm84_vm13, 1.0, %v488_v5  ;;  %v414_v10 = vsel %vm92_vm14, 1.0, %v488_v5 }
  0x9c   :  { %422 = vmatmul.mubr.msk.f32.gmra.mrb[12].mxu0 %vm142_vm0, %v406_v7  ;;  %429 = vmatmul.mubr.msk.f32.gmra.mrb[10].mxu1 %vm142_vm0, %v413_v6 }
  0x9d   :  { %v77_v8 = vpop.permute.xlu1 %76  ;;  %v53_v9 = vpop.permute.xlu0 %52  ;;  %297 = vmatprep.mubr.f32.mxu0 %v488_v5  ;;  %339 = vmatprep.mubr.f32.mxu1 %v488_v5 }
  0x9e   :  { %vm85_vm15 = vcmp.eq.s32.totalorder %v605_v43, %v53_v9  ;;  %vm93_vm1 = vcmp.eq.s32.totalorder %v605_v43, %v77_v8 }
  0x9f   :  { %v407_v11 = vsel %vm85_vm15, 1.0, %v488_v5  ;;  %v415_v12 = vsel %vm93_vm1, 1.0, %v488_v5 }
  0xa0   :  { %423 = vmatmul.mubr.msk.f32.gmra.mrb[14].mxu0 %vm142_vm0, %v407_v11  ;;  %430 = vmatmul.mubr.msk.f32.gmra.mrb[12].mxu1 %vm142_vm0, %v414_v10 }
  0xa1   :  { %345 = vmatprep.mubr.f32.mxu1 %v488_v5 }
  0xa4   :  { %431 = vmatmul.mubr.msk.f32.gmra.mrb[14].mxu1 %vm142_vm0, %v415_v12 }
 0x157   :  { %v257_v13 = vpop.f32.mrb[0].mxu0 }
 0x158   :  { %352 = vst [vmem:[#allocation2] sm:$0xff] %v257_v13  ;;  %v259_v14 = vpop.f32.mrb[1].mxu0 }
 0x159   :  { %353 = vst [vmem:[#allocation2 + $0x8] sm:$0xff] %v259_v14 }
 0x15b   :  { %v263_v15 = vpop.f32.mrb[2].mxu0  ;;  %v305_v16 = vpop.f32.mrb[0].mxu1 }
 0x15c   :  { %354 = vst [vmem:[#allocation2 + $0x10] sm:$0xff] %v263_v15  ;;  %368 = vst [vmem:[#allocation2 + $0x80] sm:$0xff] %v305_v16  ;;  %v265_v17 = vpop.f32.mrb[3].mxu0  ;;  %v307_v18 = vpop.f32.mrb[1].mxu1 }
 0x15d   :  { %355 = vst [vmem:[#allocation2 + $0x18] sm:$0xff] %v265_v17  ;;  %369 = vst [vmem:[#allocation2 + $0x88] sm:$0xff] %v307_v18 }
 0x15f   :  { %v269_v19 = vpop.f32.mrb[4].mxu0  ;;  %v311_v20 = vpop.f32.mrb[2].mxu1 }
 0x160   :  { %356 = vst [vmem:[#allocation2 + $0x20] sm:$0xff] %v269_v19  ;;  %370 = vst [vmem:[#allocation2 + $0x90] sm:$0xff] %v311_v20  ;;  %v271_v21 = vpop.f32.mrb[5].mxu0  ;;  %v313_v5 = vpop.f32.mrb[3].mxu1 }
 0x161   :  { %357 = vst [vmem:[#allocation2 + $0x28] sm:$0xff] %v271_v21  ;;  %371 = vst [vmem:[#allocation2 + $0x98] sm:$0xff] %v313_v5 }
 0x163   :  { %v275_v22 = vpop.f32.mrb[6].mxu0  ;;  %v317_v23 = vpop.f32.mrb[4].mxu1 }
 0x164   :  { %358 = vst [vmem:[#allocation2 + $0x30] sm:$0xff] %v275_v22  ;;  %372 = vst [vmem:[#allocation2 + $0xa0] sm:$0xff] %v317_v23  ;;  %v277_v24 = vpop.f32.mrb[7].mxu0  ;;  %v319_v25 = vpop.f32.mrb[5].mxu1 }
 0x165   :  { %359 = vst [vmem:[#allocation2 + $0x38] sm:$0xff] %v277_v24  ;;  %373 = vst [vmem:[#allocation2 + $0xa8] sm:$0xff] %v319_v25 }
 0x167   :  { %v281_v26 = vpop.f32.mrb[8].mxu0  ;;  %v323_v27 = vpop.f32.mrb[6].mxu1 }
 0x168   :  { %360 = vst [vmem:[#allocation2 + $0x40] sm:$0xff] %v281_v26  ;;  %374 = vst [vmem:[#allocation2 + $0xb0] sm:$0xff] %v323_v27  ;;  %v283_v28 = vpop.f32.mrb[9].mxu0  ;;  %v325_v29 = vpop.f32.mrb[7].mxu1 }
 0x169   :  { %361 = vst [vmem:[#allocation2 + $0x48] sm:$0xff] %v283_v28  ;;  %375 = vst [vmem:[#allocation2 + $0xb8] sm:$0xff] %v325_v29 }
 0x16b   :  { %v287_v30 = vpop.f32.mrb[10].mxu0  ;;  %v329_v31 = vpop.f32.mrb[8].mxu1 }
 0x16c   :  { %362 = vst [vmem:[#allocation2 + $0x50] sm:$0xff] %v287_v30  ;;  %376 = vst [vmem:[#allocation2 + $0xc0] sm:$0xff] %v329_v31  ;;  %v289_v32 = vpop.f32.mrb[11].mxu0  ;;  %v331_v33 = vpop.f32.mrb[9].mxu1 }
 0x16d   :  { %363 = vst [vmem:[#allocation2 + $0x58] sm:$0xff] %v289_v32  ;;  %377 = vst [vmem:[#allocation2 + $0xc8] sm:$0xff] %v331_v33 }
 0x16f   :  { %v293_v34 = vpop.f32.mrb[12].mxu0  ;;  %v335_v35 = vpop.f32.mrb[10].mxu1 }
 0x170   :  { %364 = vst [vmem:[#allocation2 + $0x60] sm:$0xff] %v293_v34  ;;  %378 = vst [vmem:[#allocation2 + $0xd0] sm:$0xff] %v335_v35  ;;  %v295_v36 = vpop.f32.mrb[13].mxu0  ;;  %v337_v37 = vpop.f32.mrb[11].mxu1 }
 0x171   :  { %365 = vst [vmem:[#allocation2 + $0x68] sm:$0xff] %v295_v36  ;;  %379 = vst [vmem:[#allocation2 + $0xd8] sm:$0xff] %v337_v37 }
 0x173   :  { %v299_v38 = vpop.f32.mrb[14].mxu0  ;;  %v341_v39 = vpop.f32.mrb[12].mxu1 }
 0x174   :  { %366 = vst [vmem:[#allocation2 + $0x70] sm:$0xff] %v299_v38  ;;  %380 = vst [vmem:[#allocation2 + $0xe0] sm:$0xff] %v341_v39  ;;  %v301_v40 = vpop.f32.mrb[15].mxu0  ;;  %v343_v41 = vpop.f32.mrb[13].mxu1 }
 0x175   :  { %367 = vst [vmem:[#allocation2 + $0x78] sm:$0xff] %v301_v40  ;;  %381 = vst [vmem:[#allocation2 + $0xe8] sm:$0xff] %v343_v41 }
 0x177   :  { %v347_v42 = vpop.f32.mrb[14].mxu1 }
 0x178   :  { %382 = vst [vmem:[#allocation2 + $0xf0] sm:$0xff] %v347_v42  ;;  %v349_v43 = vpop.f32.mrb[15].mxu1 }
 0x179   :  { %383 = vst [vmem:[#allocation2 + $0xf8] sm:$0xff] %v349_v43 }
 0x17a   :  { %474 = shalt.err (!%p471_p4)
}
 0x17b   :  { %s475_s20 = scalar_lea.hbm %s683_s2, 4096 }
 0x17c   :  { %p476_p5 = scmp.ne.s32.totalorder %s683_s2, %s475_s20  ;;  %p479_p6 = scmp.lt.u32.totalorder %s475_s20, %s683_s2 }
 0x17e   :  { %p481_p7 = pnand %p479_p6, %p476_p5 }
 0x180   :  { %484 = shalt.err (!%p481_p7)
}
 0x181   :  { %s490_s25 = smov 256   ;;  %s491_s26 = smov 16  }
 0x182   :  { %395 = dma.vmem_to_hbm [thread:$0]  %s390_s16, 4096, %s683_s2, [#allocation3], %s490_s25, %s490_s25, %s491_s26  }
 0x183   :  { %485 = dma.done.wait [#allocation3], 4096  }
 0x184   :  { %486 = vsyncadd [#allocation3], 4294963200 }
 0x185   :  { %399 = vsyncpa [#allocation3], 1 }

</bundles_post_ra>
